<compile_context>
chip_gen: v6e
topology: v6e:2x2x1
jax: 0.10.0
libtpu: 0.0.40
codegen_flags: <defaults>
</compile_context>

<pallas_src>
import jax
import jax.numpy as jnp
from jax.experimental import pallas as pl
from jax.experimental.pallas import tpu as pltpu

LATENT_DIM = 15
LANE = 128
SUBLANE = 8


def _round_up(n, m):
    return pl.cdiv(n, m) * m


def _pad2(a, rows, cols):
    r, c = a.shape
    return jnp.pad(a, ((0, rows - r), (0, cols - c)))


def _encoder_kernel(x_ref,
                    w1_ref, b1_ref,
                    w2_ref, b2_ref,
                    w3_ref, b3_ref,
                    w4_ref, b4_ref,
                    out_ref):
    # Whole 4-layer MLP fused; f32 accumulation on the MXU, tanh on the EUP.
    x = x_ref[...]
    h = jnp.tanh(jnp.dot(x, w1_ref[...], preferred_element_type=jnp.float32) + b1_ref[...])
    h = jnp.tanh(jnp.dot(h, w2_ref[...], preferred_element_type=jnp.float32) + b2_ref[...])
    h = jnp.tanh(jnp.dot(h, w3_ref[...], preferred_element_type=jnp.float32) + b3_ref[...])
    out_ref[...] = (
        jnp.dot(h, w4_ref[...], preferred_element_type=jnp.float32) + b4_ref[...]
    )


def prepare_encoder_params(params):
    """Pad the hidden feature dim to 128 lanes ONCE (hoisted out of the per-call path).

    Zero padding is numerically exact: padded weight rows/cols and bias lanes are zero,
    so padded hidden lanes stay tanh(0)=0 through every layer and contribute nothing.
    Input and output dims are left at their true sizes (no HBM inflation for x / mu_logvar).
    """
    input_dim, hidden_dim = params["w1"].shape
    out_dim = params["w4"].shape[1]
    hid_pad = _round_up(hidden_dim, LANE)
    f32 = jnp.float32
    return {
        "w1": _pad2(params["w1"].astype(f32), input_dim, hid_pad),
        "b1": _pad2(params["b1"].astype(f32), 1, hid_pad),
        "w2": _pad2(params["w2"].astype(f32), hid_pad, hid_pad),
        "b2": _pad2(params["b2"].astype(f32), 1, hid_pad),
        "w3": _pad2(params["w3"].astype(f32), hid_pad, hid_pad),
        "b3": _pad2(params["b3"].astype(f32), 1, hid_pad),
        "w4": _pad2(params["w4"].astype(f32), hid_pad, out_dim),
        "b4": params["b4"].astype(f32),
    }


def encoder_subnet_forward(x, params, *, latent_dim=LATENT_DIM, batch_tile=1024,
                           min_split_rows=256, xla_fallback_max_batch=64):
    """EncoderSubnet forward as a batch-tiled Pallas TPU kernel.

    x:       (B, input_dim)  float (int inputs are cast to float, like the PyTorch module)
    params:  output of prepare_encoder_params() (raw params are auto-prepared as a fallback)
    returns: (mu, logvar), each (B, latent_dim)
    """
    if jnp.issubdtype(x.dtype, jnp.integer):
        x = x.astype(jnp.float32)
    x = x.astype(jnp.float32)

    # Auto-prepare if the caller passed raw (un-padded) params; fast path is pre-prepared.
    if params["w1"].shape[1] % LANE != 0:
        params = prepare_encoder_params(params)

    B, input_dim = x.shape
    w1, b1 = params["w1"], params["b1"]
    w2, b2 = params["w2"], params["b2"]
    w3, b3 = params["w3"], params["b3"]
    w4, b4 = params["w4"], params["b4"]
    assert w1.shape[0] == input_dim
    hid_pad = w1.shape[1]
    out_dim = w4.shape[1]
    assert out_dim == 2 * latent_dim

    # Tiny batches: pallas_call launch + resident-weight DMA dwarfs the useful work;
    # the plain XLA chain is faster.  (Padded lanes are exactly zero, so this is exact.)
    if B <= xla_fallback_max_batch:
        h = jnp.tanh(x @ w1 + b1)
        h = jnp.tanh(h @ w2 + b2)
        h = jnp.tanh(h @ w3 + b3)
        out = h @ w4 + b4
        return out[:, :latent_dim], out[:, latent_dim:]

    # --- Batch tiling ------------------------------------------------------------------
    # tb must be a multiple of 8 sublanes (block rule).  The batch is padded only to a
    # multiple of 8; the grid uses cdiv and Pallas masks the partial last block.
    batch_tile = max(SUBLANE, (int(batch_tile) // SUBLANE) * SUBLANE)
    b_pad = _round_up(B, SUBLANE)
    if b_pad >= 2 * min_split_rows:
        # Guarantee >= 2 grid steps so the "parallel" batch axis feeds both v7x TensorCores
        # (harmless on single-TC v5e/v6e).
        tb = min(batch_tile, _round_up(pl.cdiv(b_pad, 2), SUBLANE))
    else:
        tb = min(batch_tile, b_pad)
    grid = (pl.cdiv(b_pad, tb),)

    xp = jnp.pad(x, ((0, b_pad - B), (0, 0))) if b_pad != B else x

    # Advisory cost estimate so XLA can schedule/overlap around this custom call.
    flops = 2 * b_pad * (input_dim * hid_pad + 2 * hid_pad * hid_pad + hid_pad * out_dim)
    transcendentals = 3 * b_pad * hid_pad
    bytes_accessed = 4 * (
        b_pad * input_dim + b_pad * out_dim
        + input_dim * hid_pad + 2 * hid_pad * hid_pad + hid_pad * out_dim
        + 3 * hid_pad + out_dim
    )

    const = lambda shape: pl.BlockSpec(shape, lambda i: (0, 0))  # resident weights/biases

    out = pl.pallas_call(
        _encoder_kernel,
        out_shape=jax.ShapeDtypeStruct((b_pad, out_dim), jnp.float32),
        grid=grid,
        in_specs=[
            # x keeps its TRUE last dim (block last dim == full array dim -> legal, and the
            # MXU handles K < 128 fine).  4x less input HBM traffic than 128-lane padding.
            pl.BlockSpec((tb, input_dim), lambda i: (i, 0)),
            const((input_dim, hid_pad)), const((1, hid_pad)),
            const((hid_pad, hid_pad)), const((1, hid_pad)),
            const((hid_pad, hid_pad)), const((1, hid_pad)),
            const((hid_pad, out_dim)), const((1, out_dim)),
        ],
        # Output keeps its TRUE last dim (2*latent): ~4.3x less write-back DMA; the mu/logvar
        # split below is a cheap slice of a small array.
        out_specs=pl.BlockSpec((tb, out_dim), lambda i: (i, 0)),
        compiler_params=pltpu.CompilerParams(
            dimension_semantics=("parallel",),
            # NOTE: if batch_tile is pushed past ~2048 on v5e, also set vmem_limit_bytes
            # (v5e's scoped-VMEM default is 16 MiB); not needed at the defaults here.
        ),
        cost_estimate=pl.CostEstimate(
            flops=flops,
            transcendentals=transcendentals,
            bytes_accessed=bytes_accessed,
        ),
    )(xp, w1, b1, w2, b2, w3, b3, w4, b4)

    mu = out[:B, :latent_dim]
    logvar = out[:B, latent_dim:]
    return mu, logvar


def init_params(key, input_dim, hidden_dim, latent_dim):
    """Deterministic synthetic parameters (PyTorch Linear shapes, stored transposed)."""
    out_dim = 2 * latent_dim
    dims = [(input_dim, hidden_dim),
            (hidden_dim, hidden_dim),
            (hidden_dim, hidden_dim),
            (hidden_dim, out_dim)]
    params = {}
    keys = jax.random.split(key, 2 * len(dims))
    for i, (fan_in, fan_out) in enumerate(dims):
        bound = 1.0 / (fan_in ** 0.5)  # matches nn.Linear default init scale
        w = jax.random.uniform(keys[2 * i], (fan_in, fan_out),
                               minval=-bound, maxval=bound, dtype=jnp.float32)
        b = jax.random.uniform(keys[2 * i + 1], (1, fan_out),
                               minval=-bound, maxval=bound, dtype=jnp.float32)
        params[f"w{i + 1}"] = w
        params[f"b{i + 1}"] = b
    return params


def reference_forward(x, params, latent_dim=LATENT_DIM):
    """Pure-JAX reference (dropout is eval-mode identity)."""
    h = x.astype(jnp.float32)
    h = jnp.tanh(h @ params["w1"] + params["b1"])
    h = jnp.tanh(h @ params["w2"] + params["b2"])
    h = jnp.tanh(h @ params["w3"] + params["b3"])
    out = h @ params["w4"] + params["b4"]
    return out[:, :latent_dim], out[:, latent_dim:]


if __name__ == "__main__":
    key = jax.random.PRNGKey(0)
    k_x, k_p, k_x2 = jax.random.split(key, 3)

    batch = 2
    input_dim = 32
    hidden_dim = 32
    latent_dim = LATENT_DIM  # 15, as in the module's global

    x = jax.random.normal(k_x, (batch, input_dim), dtype=jnp.float32)
    raw_params = init_params(k_p, input_dim, hidden_dim, latent_dim)
    params = prepare_encoder_params(raw_params)   # padded once, reused across calls

    # Force the Pallas path even at this tiny batch so the kernel itself is exercised.
    mu, logvar = encoder_subnet_forward(x, params, latent_dim=latent_dim,
                                        xla_fallback_max_batch=0)
    mu = jax.block_until_ready(mu)
    logvar = jax.block_until_ready(logvar)

    mu_ref, logvar_ref = reference_forward(x, raw_params, latent_dim)
    assert mu.shape == (batch, latent_dim)
    assert logvar.shape == (batch, latent_dim)
    assert jnp.allclose(mu, mu_ref, atol=1e-5, rtol=1e-5)
    assert jnp.allclose(logvar, logvar_ref, atol=1e-5, rtol=1e-5)

    # Larger, non-divisible batch: exercises the batch-tiled grid (>=2 steps, partial padding).
    batch_big = 1037
    x_big = jax.random.normal(k_x2, (batch_big, input_dim), dtype=jnp.float32)
    mu_b, logvar_b = encoder_subnet_forward(x_big, params, latent_dim=latent_dim)
    mu_b = jax.block_until_ready(mu_b)
    logvar_b = jax.block_until_ready(logvar_b)
    mu_b_ref, logvar_b_ref = reference_forward(x_big, raw_params, latent_dim)
    assert mu_b.shape == (batch_big, latent_dim)
    assert jnp.allclose(mu_b, mu_b_ref, atol=1e-5, rtol=1e-5)
    assert jnp.allclose(logvar_b, logvar_b_ref, atol=1e-5, rtol=1e-5)

    print("KERNEL_OK")
</pallas_src>

<mosaic_0001>
module attributes {stable_mosaic.version = 11 : i64} {
  func.func @_encoder_kernel(%arg0: i32, %arg1: memref<8x32xf32, #tpu.memory_space<vmem>>, %arg2: memref<32x128xf32, #tpu.memory_space<vmem>>, %arg3: memref<1x128xf32, #tpu.memory_space<vmem>>, %arg4: memref<128x128xf32, #tpu.memory_space<vmem>>, %arg5: memref<1x128xf32, #tpu.memory_space<vmem>>, %arg6: memref<128x128xf32, #tpu.memory_space<vmem>>, %arg7: memref<1x128xf32, #tpu.memory_space<vmem>>, %arg8: memref<128x30xf32, #tpu.memory_space<vmem>>, %arg9: memref<1x30xf32, #tpu.memory_space<vmem>>, %arg10: memref<8x30xf32, #tpu.memory_space<vmem>>) attributes {dimension_semantics = [#tpu.dimension_semantics<parallel>], iteration_bounds = array<i64: 1>, scalar_prefetch = 0 : i64, scratch_operands = 0 : i64, tpu.core_type = #tpu.core_type<tc>, window_params = [{transform_indices = @transform_0, window_bounds = array<i64: 8, 32>}, {pipeline_mode = #tpu.pipeline_mode<synchronous>, transform_indices = @transform_1, window_bounds = array<i64: 32, 128>}, {pipeline_mode = #tpu.pipeline_mode<synchronous>, transform_indices = @transform_2, window_bounds = array<i64: 1, 128>}, {pipeline_mode = #tpu.pipeline_mode<synchronous>, transform_indices = @transform_3, window_bounds = array<i64: 128, 128>}, {pipeline_mode = #tpu.pipeline_mode<synchronous>, transform_indices = @transform_4, window_bounds = array<i64: 1, 128>}, {pipeline_mode = #tpu.pipeline_mode<synchronous>, transform_indices = @transform_5, window_bounds = array<i64: 128, 128>}, {pipeline_mode = #tpu.pipeline_mode<synchronous>, transform_indices = @transform_6, window_bounds = array<i64: 1, 128>}, {pipeline_mode = #tpu.pipeline_mode<synchronous>, transform_indices = @transform_7, window_bounds = array<i64: 128, 30>}, {pipeline_mode = #tpu.pipeline_mode<synchronous>, transform_indices = @transform_8, window_bounds = array<i64: 1, 30>}, {transform_indices = @transform_9, window_bounds = array<i64: 8, 30>}]} {
    %c0 = arith.constant 0 : index
    %c0_0 = arith.constant 0 : index
    %0 = vector.load %arg1[%c0, %c0_0] : memref<8x32xf32, #tpu.memory_space<vmem>>, vector<8x32xf32>
    %c0_1 = arith.constant 0 : index
    %c0_2 = arith.constant 0 : index
    %1 = vector.load %arg2[%c0_1, %c0_2] : memref<32x128xf32, #tpu.memory_space<vmem>>, vector<32x128xf32>
    %cst = arith.constant dense<0.000000e+00> : vector<8x128xf32>
    %2 = tpu.matmul %0, %1, %cst {dimension_numbers = #tpu.dot_dimension_numbers<[1], [0], [0], [1], [0, 0, 1, 1], [], []>} : vector<8x32xf32>, vector<32x128xf32>, vector<8x128xf32> -> vector<8x128xf32>
    %c0_3 = arith.constant 0 : index
    %c0_4 = arith.constant 0 : index
    %3 = vector.load %arg3[%c0_3, %c0_4] : memref<1x128xf32, #tpu.memory_space<vmem>>, vector<1x128xf32>
    %4 = vector.broadcast %3 : vector<1x128xf32> to vector<8x128xf32>
    %5 = arith.addf %2, %4 : vector<8x128xf32>
    %6 = math.tanh %5 : vector<8x128xf32>
    %c0_5 = arith.constant 0 : index
    %c0_6 = arith.constant 0 : index
    %7 = vector.load %arg4[%c0_5, %c0_6] : memref<128x128xf32, #tpu.memory_space<vmem>>, vector<128x128xf32>
    %cst_7 = arith.constant dense<0.000000e+00> : vector<8x128xf32>
    %8 = tpu.matmul %6, %7, %cst_7 {dimension_numbers = #tpu.dot_dimension_numbers<[1], [0], [0], [1], [0, 0, 1, 1], [], []>} : vector<8x128xf32>, vector<128x128xf32>, vector<8x128xf32> -> vector<8x128xf32>
    %c0_8 = arith.constant 0 : index
    %c0_9 = arith.constant 0 : index
    %9 = vector.load %arg5[%c0_8, %c0_9] : memref<1x128xf32, #tpu.memory_space<vmem>>, vector<1x128xf32>
    %10 = vector.broadcast %9 : vector<1x128xf32> to vector<8x128xf32>
    %11 = arith.addf %8, %10 : vector<8x128xf32>
    %12 = math.tanh %11 : vector<8x128xf32>
    %c0_10 = arith.constant 0 : index
    %c0_11 = arith.constant 0 : index
    %13 = vector.load %arg6[%c0_10, %c0_11] : memref<128x128xf32, #tpu.memory_space<vmem>>, vector<128x128xf32>
    %cst_12 = arith.constant dense<0.000000e+00> : vector<8x128xf32>
    %14 = tpu.matmul %12, %13, %cst_12 {dimension_numbers = #tpu.dot_dimension_numbers<[1], [0], [0], [1], [0, 0, 1, 1], [], []>} : vector<8x128xf32>, vector<128x128xf32>, vector<8x128xf32> -> vector<8x128xf32>
    %c0_13 = arith.constant 0 : index
    %c0_14 = arith.constant 0 : index
    %15 = vector.load %arg7[%c0_13, %c0_14] : memref<1x128xf32, #tpu.memory_space<vmem>>, vector<1x128xf32>
    %16 = vector.broadcast %15 : vector<1x128xf32> to vector<8x128xf32>
    %17 = arith.addf %14, %16 : vector<8x128xf32>
    %18 = math.tanh %17 : vector<8x128xf32>
    %c0_15 = arith.constant 0 : index
    %c0_16 = arith.constant 0 : index
    %19 = vector.load %arg8[%c0_15, %c0_16] : memref<128x30xf32, #tpu.memory_space<vmem>>, vector<128x30xf32>
    %cst_17 = arith.constant dense<0.000000e+00> : vector<8x30xf32>
    %20 = tpu.matmul %18, %19, %cst_17 {dimension_numbers = #tpu.dot_dimension_numbers<[1], [0], [0], [1], [0, 0, 1, 1], [], []>} : vector<8x128xf32>, vector<128x30xf32>, vector<8x30xf32> -> vector<8x30xf32>
    %c0_18 = arith.constant 0 : index
    %c0_19 = arith.constant 0 : index
    %21 = vector.load %arg9[%c0_18, %c0_19] : memref<1x30xf32, #tpu.memory_space<vmem>>, vector<1x30xf32>
    %22 = vector.broadcast %21 : vector<1x30xf32> to vector<8x30xf32>
    %23 = arith.addf %20, %22 : vector<8x30xf32>
    %c0_20 = arith.constant 0 : index
    %c0_21 = arith.constant 0 : index
    %24 = vector.load %arg10[%c0_20, %c0_21] : memref<8x30xf32, #tpu.memory_space<vmem>>, vector<8x30xf32>
    tpu.vector_store %arg10[%c0_20, %c0_21], %23 {strides = array<i32>} : memref<8x30xf32, #tpu.memory_space<vmem>>, vector<8x30xf32>,
    return
  }
  func.func @transform_0(%arg0: i32) -> (i32, i32) {
    %c0_i32 = arith.constant 0 : i32
    %c0_i32_0 = arith.constant 0 : i32
    return %arg0, %c0_i32 : i32, i32
  }
  func.func @transform_1(%arg0: i32) -> (i32, i32) {
    %c0_i32 = arith.constant 0 : i32
    %c0_i32_0 = arith.constant 0 : i32
    %c0_i32_1 = arith.constant 0 : i32
    return %c0_i32, %c0_i32_0 : i32, i32
  }
  func.func @transform_2(%arg0: i32) -> (i32, i32) {
    %c0_i32 = arith.constant 0 : i32
    %c0_i32_0 = arith.constant 0 : i32
    %c0_i32_1 = arith.constant 0 : i32
    return %c0_i32, %c0_i32_0 : i32, i32
  }
  func.func @transform_3(%arg0: i32) -> (i32, i32) {
    %c0_i32 = arith.constant 0 : i32
    %c0_i32_0 = arith.constant 0 : i32
    %c0_i32_1 = arith.constant 0 : i32
    return %c0_i32, %c0_i32_0 : i32, i32
  }
  func.func @transform_4(%arg0: i32) -> (i32, i32) {
    %c0_i32 = arith.constant 0 : i32
    %c0_i32_0 = arith.constant 0 : i32
    %c0_i32_1 = arith.constant 0 : i32
    return %c0_i32, %c0_i32_0 : i32, i32
  }
  func.func @transform_5(%arg0: i32) -> (i32, i32) {
    %c0_i32 = arith.constant 0 : i32
    %c0_i32_0 = arith.constant 0 : i32
    %c0_i32_1 = arith.constant 0 : i32
    return %c0_i32, %c0_i32_0 : i32, i32
  }
  func.func @transform_6(%arg0: i32) -> (i32, i32) {
    %c0_i32 = arith.constant 0 : i32
    %c0_i32_0 = arith.constant 0 : i32
    %c0_i32_1 = arith.constant 0 : i32
    return %c0_i32, %c0_i32_0 : i32, i32
  }
  func.func @transform_7(%arg0: i32) -> (i32, i32) {
    %c0_i32 = arith.constant 0 : i32
    %c0_i32_0 = arith.constant 0 : i32
    %c0_i32_1 = arith.constant 0 : i32
    return %c0_i32, %c0_i32_0 : i32, i32
  }
  func.func @transform_8(%arg0: i32) -> (i32, i32) {
    %c0_i32 = arith.constant 0 : i32
    %c0_i32_0 = arith.constant 0 : i32
    %c0_i32_1 = arith.constant 0 : i32
    return %c0_i32, %c0_i32_0 : i32, i32
  }
  func.func @transform_9(%arg0: i32) -> (i32, i32) {
    %c0_i32 = arith.constant 0 : i32
    %c0_i32_0 = arith.constant 0 : i32
    return %arg0, %c0_i32 : i32, i32
  }
}

</mosaic_0001>

<bundles_post_ra>
// kernel: tpu_custom_call.1
= control target key start
LH: loop header
LB: loop body
LE: loop exit
PB: predicated region body
PF: predicated region fallthrough
CT: control target
= control target key end

     0   :  { %14 = vsyncpa [#allocation3], 0  ;;  %s947_s0 = inlined_call_operand.hbm [shape: f32[8,32], index: 0, kind: input, shape index: {}]   ;;  %s948_s1 = inlined_call_operand.vmem [shape: f32[32,128], index: 1, kind: input, shape index: {}]   ;;  %s949_s2 = inlined_call_operand.vmem [shape: f32[1,128], index: 2, kind: input, shape index: {}]   ;;  %s950_s3 = inlined_call_operand.vmem [shape: f32[128,128], index: 3, kind: input, shape index: {}]   ;;  %s951_s4 = inlined_call_operand.vmem [shape: f32[1,128], index: 4, kind: input, shape index: {}]   ;;  %s952_s5 = inlined_call_operand.hbm [shape: f32[128,128], index: 5, kind: input, shape index: {}]   ;;  %s953_s6 = inlined_call_operand.vmem [shape: f32[1,128], index: 6, kind: input, shape index: {}]   ;;  %s954_s7 = inlined_call_operand.vmem [shape: f32[128,30], index: 7, kind: input, shape index: {}]   ;;  %s955_s8 = inlined_call_operand.vmem [shape: f32[1,30], index: 8, kind: input, shape index: {}]   ;;  %s956_s9 = inlined_call_operand.hbm [shape: f32[8,30], index: 9, kind: output, shape index: {}]  }
   0x1   :  { %15 = vsyncpa [#allocation6], 0 }
   0x2   :  { %16 = vsyncpa [#allocation4], 0  ;;  %s701_s30 = smov [#allocation2]   ;;  %s702_s11 = smov [#allocation5]  }
   0x3   :  { %s23_s10 = sshll.u32 %s701_s30, 4  ;;  %s40_s12 = sshll.u32 %s702_s11, 4  ;;  %s24_s10 = int_to_ptr.vmem [resolvable:$true] %s23_s10  ;;  %s41_s12 = int_to_ptr.vmem [resolvable:$true] %s40_s12 }
   0x4   :  { %s643_s13 = scalar_lea.vmem %s24_s10, 128  ;;  %p648_p1 = scmp.lt.s32.totalorder %s24_s10, %s24_s10 }
   0x5   :  { %p644_p0 = scmp.ne.s32.totalorder %s24_s10, %s643_s13  ;;  %p649_p2 = scmp.lt.s32.totalorder %s643_s13, %s643_s13 }
   0x7   :  { %p650_p3 = por %p649_p2, %p648_p1 }
   0x9   :  { %p651_p4 = pnand %p650_p3, %p644_p0 }
   0xb   :  { %654 = shalt.err (!%p651_p4)
}
   0xc   :  { %26 = dma.hbm_to_vmem [thread:$0]  %s947_s0, 128, %s24_s10, [#allocation3]  }
   0xd   :  { %s663_s16 = scalar_lea.vmem %s41_s12, 2048  ;;  %p668_p6 = scmp.lt.s32.totalorder %s41_s12, %s41_s12 }
   0xe   :  { %p664_p5 = scmp.ne.s32.totalorder %s41_s12, %s663_s16  ;;  %p669_p7 = scmp.lt.s32.totalorder %s663_s16, %s663_s16 }
  0x10   :  { %p670_p8 = por %p669_p7, %p668_p6 }
  0x12   :  { %p671_p9 = pnand %p670_p8, %p664_p5 }
  0x14   :  { %674 = shalt.err (!%p671_p9)
}
  0x15   :  { %s703_s17 = smov 128   ;;  %s704_s18 = smov 8  }
  0x16   :  { %46 = dma.hbm_to_vmem [thread:$0]  %s952_s5, 2048, %s41_s12, [#allocation6], %s703_s17, %s703_s17, %s704_s18  }
  0x17   :  { %695 = dma.done.wait [#allocation3], 128  }
  0x18   :  { %696 = vsyncadd [#allocation3], 4294967168 }
  0x19   :  { %697 = dma.done.wait [#allocation6], 2048  }
  0x1a   :  { %698 = vsyncadd [#allocation6], 4294965248  ;;  %v705_v0 = vmov 0.0   ;;  %vm706_vm0 = vmmov 0   ;;  %v63_v1 = vld [vmem:[%s948_s1 + $0x18] sm:$0xff]  ;;  %v62_v2 = vld [vmem:[%s948_s1 + $0x10] sm:$0xff] }
  0x1b   :  { %506 = vmatprep.subr.mxu0 %v705_v0  ;;  %514 = vmatprep.mubr.msk.f32.mxu0 %vm706_vm0, %v705_v0  ;;  %v161_v3 = vld [vmem:[%s950_s3 + $0x78] sm:$0xff]  ;;  %v61_v4 = vld [vmem:[%s948_s1 + $0x8] sm:$0xff]  ;;  %v160_v5 = vld [vmem:[%s950_s3 + $0x70] sm:$0xff]  ;;  %vm71_vm1 = vcmask 261120   ;;  %s707_s22 = smov [#allocation7]   ;;  %vm427_vm2 = vcmask 244736  }
  0x1c   :  { %517 = vmatprep.subr.mxu1 %v705_v0  ;;  %549 = vmatprep.mubr.msk.f32.mxu1 %vm706_vm0, %v705_v0  ;;  %v159_v6 = vld [vmem:[%s950_s3 + $0x68] sm:$0xff]  ;;  %v60_v7 = vld [vmem:[%s948_s1] sm:$0xff]  ;;  %v157_v10 = vld [vmem:[%s950_s3 + $0x58] sm:$0xff] }
  0x1d   :  { %507 = vmatpush3.msra.mxu0 %v63_v1  ;;  %518 = vmatpush3.msra.mxu1 %v161_v3  ;;  %v59_v8 = vld [vmem:[#allocation2] sm:$0xff]  ;;  %v156_v11 = vld [vmem:[%s950_s3 + $0x50] sm:$0xff]  ;;  %v155_v12 = vld [vmem:[%s950_s3 + $0x48] sm:$0xff] }
  0x1e   :  { %508 = vmatprep.subr.mxu0 %v705_v0  ;;  %519 = vmatprep.subr.mxu1 %v705_v0  ;;  %v158_v9 = vld [vmem:[%s950_s3 + $0x60] sm:$0xff]  ;;  %v153_v14 = vld [vmem:[%s950_s3 + $0x38] sm:$0xff]  ;;  %v152_v15 = vld [vmem:[%s950_s3 + $0x30] sm:$0xff] }
  0x1f   :  { %509 = vmatpush3.msra.mxu0 %v62_v2  ;;  %520 = vmatpush3.msra.mxu1 %v160_v5  ;;  %v154_v13 = vld [vmem:[%s950_s3 + $0x40] sm:$0xff]  ;;  %v151_v16 = vld [vmem:[%s950_s3 + $0x28] sm:$0xff]  ;;  %v149_v18 = vld [vmem:[%s950_s3 + $0x18] sm:$0xff] }
  0x20   :  { %510 = vmatprep.subr.mxu0 %v705_v0  ;;  %521 = vmatprep.subr.mxu1 %v705_v0  ;;  %v150_v17 = vld [vmem:[%s950_s3 + $0x20] sm:$0xff]  ;;  %v148_v19 = vld [vmem:[%s950_s3 + $0x10] sm:$0xff]  ;;  %v147_v20 = vld [vmem:[%s950_s3 + $0x8] sm:$0xff] }
  0x21   :  { %511 = vmatpush3.msra.mxu0 %v61_v4  ;;  %522 = vmatpush3.msra.mxu1 %v159_v6  ;;  %v146_v21 = vld [vmem:[%s950_s3] sm:$0xff]  ;;  %v254_v23 = vld [vmem:[#allocation5 + $0x70] sm:$0xff]  ;;  %v253_v24 = vld [vmem:[#allocation5 + $0x68] sm:$0xff] }
  0x22   :  { %512 = vmatprep.subr.mxu0 %v705_v0  ;;  %523 = vmatprep.subr.mxu1 %v705_v0  ;;  %v255_v22 = vld [vmem:[#allocation5 + $0x78] sm:$0xff]  ;;  %v252_v25 = vld [vmem:[#allocation5 + $0x60] sm:$0xff]  ;;  %v250_v27 = vld [vmem:[#allocation5 + $0x50] sm:$0xff] }
  0x23   :  { %513 = vmatpush3.msra.mxu0 %v60_v7  ;;  %524 = vmatpush3.msra.mxu1 %v158_v9  ;;  %v251_v26 = vld [vmem:[#allocation5 + $0x58] sm:$0xff]  ;;  %v249_v28 = vld [vmem:[#allocation5 + $0x48] sm:$0xff]  ;;  %v248_v34 = vld [vmem:[#allocation5 + $0x40] sm:$0xff] }
  0x24   :  { %515 = vmatmul.mubr.msk.f32.vlgmr.msra.gmra.mxu0 %vm71_vm1, %v59_v8  ;;  %525 = vmatprep.subr.mxu1 %v705_v0  ;;  %v445_v29 = vld [vmem:[%s949_s2] ss:$0 sm:$0xff]  ;;  %v246_v36 = vld [vmem:[#allocation5 + $0x30] sm:$0xff]  ;;  %v245_v37 = vld [vmem:[#allocation5 + $0x28] sm:$0xff] }
  0x25   :  { %552 = vmatprep.subr.mxu0 %v705_v0  ;;  %526 = vmatpush3.msra.mxu1 %v157_v10  ;;  %v247_v35 = vld [vmem:[#allocation5 + $0x38] sm:$0xff]  ;;  %v244_v38 = vld [vmem:[#allocation5 + $0x20] sm:$0xff]  ;;  %v242_v40 = vld [vmem:[#allocation5 + $0x10] sm:$0xff] }
  0x26   :  { %584 = vmatprep.mubr.msk.f32.mxu0 %vm706_vm0, %v705_v0  ;;  %527 = vmatprep.subr.mxu1 %v705_v0  ;;  %v243_v39 = vld [vmem:[#allocation5 + $0x18] sm:$0xff]  ;;  %v241_v41 = vld [vmem:[#allocation5 + $0x8] sm:$0xff]  ;;  %v240_v42 = vld [vmem:[#allocation5] sm:$0xff] }
  0x27   :  { %528 = vmatpush3.msra.mxu1 %v156_v11  ;;  %553 = vmatpush3.msra.mxu0 %v255_v22  ;;  %v349_v43 = vld [vmem:[%s954_s7 + $0x78] sm:$0xff]  ;;  %v348_v44 = vld [vmem:[%s954_s7 + $0x70] sm:$0xff]  ;;  %v347_v45 = vld [vmem:[%s954_s7 + $0x68] sm:$0xff] }
  0x28   :  { %529 = vmatprep.subr.mxu1 %v705_v0  ;;  %554 = vmatprep.subr.mxu0 %v705_v0  ;;  %v346_v46 = vld [vmem:[%s954_s7 + $0x60] sm:$0xff]  ;;  %v345_v47 = vld [vmem:[%s954_s7 + $0x58] sm:$0xff]  ;;  %v344_v48 = vld [vmem:[%s954_s7 + $0x50] sm:$0xff] }
  0x29   :  { %530 = vmatpush3.msra.mxu1 %v155_v12  ;;  %555 = vmatpush3.msra.mxu0 %v254_v23  ;;  %v343_v49 = vld [vmem:[%s954_s7 + $0x48] sm:$0xff]  ;;  %v447_v50 = vld [vmem:[%s951_s4] ss:$0 sm:$0xff]  ;;  %v341_v56 = vld [vmem:[%s954_s7 + $0x38] sm:$0xff] }
  0x2a   :  { %531 = vmatprep.subr.mxu1 %v705_v0  ;;  %556 = vmatprep.subr.mxu0 %v705_v0  ;;  %v342_v55 = vld [vmem:[%s954_s7 + $0x40] sm:$0xff]  ;;  %v340_v57 = vld [vmem:[%s954_s7 + $0x30] sm:$0xff]  ;;  %v339_v58 = vld [vmem:[%s954_s7 + $0x28] sm:$0xff] }
  0x2b   :  { %532 = vmatpush3.msra.mxu1 %v154_v13  ;;  %557 = vmatpush3.msra.mxu0 %v253_v24  ;;  %v338_v59 = vld [vmem:[%s954_s7 + $0x20] sm:$0xff]  ;;  %v337_v60 = vld [vmem:[%s954_s7 + $0x18] sm:$0xff]  ;;  %v336_v61 = vld [vmem:[%s954_s7 + $0x10] sm:$0xff] }
  0x2c   :  { %533 = vmatprep.subr.mxu1 %v705_v0  ;;  %558 = vmatprep.subr.mxu0 %v705_v0  ;;  %v335_v62 = vld [vmem:[%s954_s7 + $0x8] sm:$0xff]  ;;  %v334_v63 = vld [vmem:[%s954_s7] sm:$0xff]  ;;  %s435_s7 = sshll.u32 %s707_s22, 4  ;;  %s436_s7 = int_to_ptr.vmem [resolvable:$true] %s435_s7 }
  0x2d   :  { %534 = vmatpush3.msra.mxu1 %v153_v14  ;;  %559 = vmatpush3.msra.mxu0 %v252_v25  ;;  %v448_v1 = vld [vmem:[%s953_s6] ss:$0 sm:$0xff]  ;;  %s675_s23 = scalar_lea.vmem %s436_s7, 128  ;;  %p680_p11 = scmp.lt.s32.totalorder %s436_s7, %s436_s7 }
  0x2e   :  { %535 = vmatprep.subr.mxu1 %v705_v0  ;;  %560 = vmatprep.subr.mxu0 %v705_v0  ;;  %v449_v6 = vld [vmem:[%s955_s8] ss:$0 sm:$0xff]  ;;  %p676_p10 = scmp.ne.s32.totalorder %s436_s7, %s675_s23  ;;  %p681_p12 = scmp.lt.s32.totalorder %s675_s23, %s675_s23 }
  0x2f   :  { %536 = vmatpush3.msra.mxu1 %v152_v15  ;;  %561 = vmatpush3.msra.mxu0 %v251_v26 }
  0x30   :  { %537 = vmatprep.subr.mxu1 %v705_v0  ;;  %562 = vmatprep.subr.mxu0 %v705_v0  ;;  %p682_p13 = por %p681_p12, %p680_p11 }
  0x31   :  { %538 = vmatpush3.msra.mxu1 %v151_v16  ;;  %563 = vmatpush3.msra.mxu0 %v250_v27 }
  0x32   :  { %539 = vmatprep.subr.mxu1 %v705_v0  ;;  %564 = vmatprep.subr.mxu0 %v705_v0  ;;  %p683_p0 = pnand %p682_p13, %p676_p10 }
  0x33   :  { %540 = vmatpush3.msra.mxu1 %v150_v17  ;;  %565 = vmatpush3.msra.mxu0 %v249_v28 }
  0x34   :  { %541 = vmatprep.subr.mxu1 %v705_v0  ;;  %566 = vmatprep.subr.mxu0 %v705_v0 }
  0x35   :  { %542 = vmatpush3.msra.mxu1 %v149_v18  ;;  %567 = vmatpush3.msra.mxu0 %v248_v34 }
  0x36   :  { %543 = vmatprep.subr.mxu1 %v705_v0  ;;  %568 = vmatprep.subr.mxu0 %v705_v0 }
  0x37   :  { %544 = vmatpush3.msra.mxu1 %v148_v19  ;;  %569 = vmatpush3.msra.mxu0 %v247_v35 }
  0x38   :  { %545 = vmatprep.subr.mxu1 %v705_v0  ;;  %570 = vmatprep.subr.mxu0 %v705_v0 }
  0x39   :  { %546 = vmatpush3.msra.mxu1 %v147_v20  ;;  %571 = vmatpush3.msra.mxu0 %v246_v36 }
  0x3a   :  { %547 = vmatprep.subr.mxu1 %v705_v0  ;;  %572 = vmatprep.subr.mxu0 %v705_v0 }
  0x3b   :  { %548 = vmatpush3.msra.mxu1 %v146_v21  ;;  %573 = vmatpush3.msra.mxu0 %v245_v37 }
  0x3c   :  { %587 = vmatprep.subr.mxu1 %v705_v0  ;;  %574 = vmatprep.subr.mxu0 %v705_v0 }
  0x3d   :  { %575 = vmatpush3.msra.mxu0 %v244_v38 }
  0x3e   :  { %576 = vmatprep.subr.mxu0 %v705_v0 }
  0x3f   :  { %577 = vmatpush3.msra.mxu0 %v243_v39 }
  0x40   :  { %578 = vmatprep.subr.mxu0 %v705_v0 }
  0x41   :  { %579 = vmatpush3.msra.mxu0 %v242_v40 }
  0x42   :  { %580 = vmatprep.subr.mxu0 %v705_v0 }
  0x43   :  { %581 = vmatpush3.msra.mxu0 %v241_v41 }
  0x44   :  { %582 = vmatprep.subr.mxu0 %v705_v0 }
  0x45   :  { %583 = vmatpush3.msra.mxu0 %v240_v42 }
  0xe4   :  { %v141_v30 = vpop.f32.mrf.mxu0 }
  0xe5   :  { %v142_v31 = vadd.f32 %v445_v29, %v141_v30 }
  0xe6   :  { %v516_v32 = vpop.f32.mrf.mxu0 }
  0xe7   :  { %629 = vtanh.f32 %v142_v31 }
  0xf4   :  { %v630_v33 = vpop.eup %629 }
  0xf5   :  { %550 = vmatmul.mubr.f32.vlgmr.msra.gmra.mxu1 %v630_v33 }
  0xf6   :  { %619 = vmatprep.mubr.msk.f32.mxu1 %vm706_vm0, %v705_v0  ;;  %588 = vmatpush3.msra.mxu1 %v349_v43 }
  0xf7   :  { %589 = vmatprep.subr.mxu1 %v705_v0 }
  0xf8   :  { %590 = vmatpush3.msra.mxu1 %v348_v44 }
  0xf9   :  { %591 = vmatprep.subr.mxu1 %v705_v0 }
  0xfa   :  { %592 = vmatpush3.msra.mxu1 %v347_v45 }
  0xfb   :  { %593 = vmatprep.subr.mxu1 %v705_v0 }
  0xfc   :  { %594 = vmatpush3.msra.mxu1 %v346_v46 }
  0xfd   :  { %595 = vmatprep.subr.mxu1 %v705_v0 }
  0xfe   :  { %596 = vmatpush3.msra.mxu1 %v345_v47 }
  0xff   :  { %597 = vmatprep.subr.mxu1 %v705_v0 }
 0x100   :  { %598 = vmatpush3.msra.mxu1 %v344_v48 }
 0x101   :  { %599 = vmatprep.subr.mxu1 %v705_v0 }
 0x102   :  { %600 = vmatpush3.msra.mxu1 %v343_v49 }
 0x103   :  { %601 = vmatprep.subr.mxu1 %v705_v0 }
 0x104   :  { %602 = vmatpush3.msra.mxu1 %v342_v55 }
 0x105   :  { %603 = vmatprep.subr.mxu1 %v705_v0 }
 0x106   :  { %604 = vmatpush3.msra.mxu1 %v341_v56 }
 0x107   :  { %605 = vmatprep.subr.mxu1 %v705_v0 }
 0x108   :  { %606 = vmatpush3.msra.mxu1 %v340_v57 }
 0x109   :  { %607 = vmatprep.subr.mxu1 %v705_v0 }
 0x10a   :  { %608 = vmatpush3.msra.mxu1 %v339_v58 }
 0x10b   :  { %609 = vmatprep.subr.mxu1 %v705_v0 }
 0x10c   :  { %610 = vmatpush3.msra.mxu1 %v338_v59 }
 0x10d   :  { %611 = vmatprep.subr.mxu1 %v705_v0 }
 0x10e   :  { %612 = vmatpush3.msra.mxu1 %v337_v60 }
 0x10f   :  { %613 = vmatprep.subr.mxu1 %v705_v0 }
 0x110   :  { %614 = vmatpush3.msra.mxu1 %v336_v61 }
 0x111   :  { %615 = vmatprep.subr.mxu1 %v705_v0 }
 0x112   :  { %616 = vmatpush3.msra.mxu1 %v335_v62 }
 0x113   :  { %617 = vmatprep.subr.mxu1 %v705_v0 }
 0x114   :  { %618 = vmatpush3.msra.mxu1 %v334_v63 }
 0x1b5   :  { %v235_v51 = vpop.f32.mrf.mxu1 }
 0x1b6   :  { %v236_v52 = vadd.f32 %v447_v50, %v235_v51 }
 0x1b7   :  { %v551_v53 = vpop.f32.mrf.mxu1 }
 0x1b8   :  { %631 = vtanh.f32 %v236_v52 }
 0x1c5   :  { %v632_v54 = vpop.eup %631 }
 0x1c6   :  { %585 = vmatmul.mubr.f32.vlgmr.msra.gmra.mxu0 %v632_v54 }
 0x286   :  { %v329_v2 = vpop.f32.mrf.mxu0 }
 0x287   :  { %v330_v3 = vadd.f32 %v448_v1, %v329_v2 }
 0x288   :  { %v586_v4 = vpop.f32.mrf.mxu0 }
 0x289   :  { %633 = vtanh.f32 %v330_v3 }
 0x296   :  { %v634_v5 = vpop.eup %633 }
 0x297   :  { %620 = vmatmul.mubr.f32.vlgmr.msra.gmra.mxu1 %v634_v5 }
 0x357   :  { %v423_v7 = vpop.f32.mrf.mxu1 }
 0x358   :  { %v424_v0 = vadd.f32 %v449_v6, %v423_v7 }
 0x359   :  { %v621_v8 = vpop.f32.mrf.mxu1 }
 0x35a   :  { %428 = vst.msk [vmem:[#allocation7] sm:$0xff] %vm427_vm2, %v424_v0 }
 0x35b   :  { %686 = shalt.err (!%p683_p0)
}
 0x35c   :  { %438 = dma.vmem_to_hbm [thread:$0]  %s436_s7, 128, %s956_s9, [#allocation4]  }
 0x35d   :  { %699 = dma.done.wait [#allocation4], 128  }
 0x35e   :  { %700 = vsyncadd [#allocation4], 4294967168 }
 0x35f   :  { %442 = vsyncpa [#allocation3], 1 }
 0x360   :  { %443 = vsyncpa [#allocation6], 1 }
 0x361   :  { %444 = vsyncpa [#allocation4], 1 }

</bundles_post_ra>
